<compile_context>
chip_gen: v6e
topology: v6e:2x2x1
jax: 0.10.0
libtpu: 0.0.40
codegen_flags: <defaults>
</compile_context>

<pallas_src>
import jax
import jax.numpy as jnp
from jax.experimental import pallas as pl
from jax.experimental.pallas import tpu as pltpu

HIDDEN = 32          # hidden_channels
IN_F = 5             # input node feature dim (linear1: 5 -> 64)
OUT_F = 60           # linear5: hidden -> 30 * 2
N_BIAS_ROWS = 8      # 7 bias rows used, padded to 8 sublanes
BIAS_LANES = 128     # lane-padded bias slab width


# ----------------------------------------------------------------------------
# Pallas kernel: full forward chain for ONE graph (one grid step) in VMEM.
# ----------------------------------------------------------------------------
def _gnn_mtl_kernel(x_ref, a_ref, w1_ref, w2_ref, wmid_ref, w5_ref, b_ref,
                    out_ref):
    f32 = jnp.float32
    H = HIDDEN

    x = x_ref[...].astype(f32)      # [N, IN_F]
    a = a_ref[...]                  # [N, N] bf16 (symmetric-normalized adjacency)

    def bias(row, width):
        return b_ref[row:row + 1, :width]            # [1, width], static slice

    def lin(h, w, row, width):
        return jnp.dot(h, w, preferred_element_type=f32) + bias(row, width)

    def relu(h):
        return jnp.maximum(h, 0.0)

    def conv(h, w, row):
        hw = jnp.dot(h, w, preferred_element_type=f32)           # [N, H] f32
        agg = jnp.dot(a, hw.astype(jnp.bfloat16),                # bf16 MXU path
                      preferred_element_type=f32)                # f32 accumulation
        return agg + bias(row, H)

    h = relu(lin(x, w1_ref[...], 0, 64))                  # linear1 -> [N, 64]
    h = relu(lin(h, w2_ref[...], 1, H))                   # linear2 -> [N, H]
    h = relu(lin(h, wmid_ref[0:H, :], 2, H)) + h          # linear3 + residual
    h = relu(lin(h, wmid_ref[H:2 * H, :], 3, H)) + h      # linear4 + residual
    h = relu(conv(h, wmid_ref[2 * H:3 * H, :], 4))        # conv1
    h = relu(conv(h, wmid_ref[3 * H:4 * H, :], 5))        # conv2
    out_ref[...] = lin(h, w5_ref[...], 6, OUT_F).astype(out_ref.dtype)  # linear5


# ----------------------------------------------------------------------------
# Glue: adjacency construction (precomputed, scatter-free), param init/packing.
# ----------------------------------------------------------------------------
def build_gcn_adj(edge_index, num_nodes):
    """Dense A_hat = D^-1/2 (A + I) D^-1/2 from edge_index [2, E] (src -> dst).

    Scatter-free one-hot-matmul build; dedupes parallel edges (matches the
    previous a.at[dst, src].set(1.0) semantics)."""
    src = edge_index[0]
    dst = edge_index[1]
    nodes = jnp.arange(num_nodes, dtype=edge_index.dtype)
    oh_dst = (dst[:, None] == nodes[None, :]).astype(jnp.float32)   # [E, N]
    oh_src = (src[:, None] == nodes[None, :]).astype(jnp.float32)   # [E, N]
    a = jnp.minimum(oh_dst.T @ oh_src, 1.0)                         # dedupe
    a = a + jnp.eye(num_nodes, dtype=jnp.float32)                   # self loops
    deg = a.sum(axis=1)
    d_inv_sqrt = jax.lax.rsqrt(deg)                                 # deg >= 1
    return a * d_inv_sqrt[:, None] * d_inv_sqrt[None, :]


def _linear_params(key, fan_in, fan_out):
    """PyTorch nn.Linear default init: U(-1/sqrt(fan_in), 1/sqrt(fan_in))."""
    kw, kb = jax.random.split(key)
    bound = 1.0 / jnp.sqrt(jnp.float32(fan_in))
    w = jax.random.uniform(kw, (fan_in, fan_out), jnp.float32, -bound, bound)
    b = jax.random.uniform(kb, (1, fan_out), jnp.float32, -bound, bound)
    return w, b


def init_params(seed=21, hidden=HIDDEN):
    keys = jax.random.split(jax.random.PRNGKey(seed), 7)
    p = {}
    p["w1"], p["b1"] = _linear_params(keys[0], IN_F, 64)
    p["w2"], p["b2"] = _linear_params(keys[1], 64, hidden)
    p["w3"], p["b3"] = _linear_params(keys[2], hidden, hidden)
    p["w4"], p["b4"] = _linear_params(keys[3], hidden, hidden)
    p["wc1"], p["bc1"] = _linear_params(keys[4], hidden, hidden)    # conv1
    p["wc2"], p["bc2"] = _linear_params(keys[5], hidden, hidden)    # conv2
    p["w5"], p["b5"] = _linear_params(keys[6], hidden, OUT_F)
    return p


def pack_params(p):
    """Coalesce 14 weight/bias operands into 5 VMEM slabs."""
    def pad_bias(b):
        return jnp.pad(b, ((0, 0), (0, BIAS_LANES - b.shape[1])))

    b_all = jnp.concatenate(
        [pad_bias(p["b1"]), pad_bias(p["b2"]), pad_bias(p["b3"]),
         pad_bias(p["b4"]), pad_bias(p["bc1"]), pad_bias(p["bc2"]),
         pad_bias(p["b5"]), jnp.zeros((1, BIAS_LANES), jnp.float32)], axis=0)
    # [4H, H] stack of the four hidden->hidden weights (sublane-aligned slices).
    w_mid = jnp.concatenate([p["w3"], p["w4"], p["wc1"], p["wc2"]], axis=0)
    return {"w1": p["w1"], "w2": p["w2"], "w_mid": w_mid, "w5": p["w5"],
            "b_all": b_all}


@jax.jit
def gnn_mtl_forward(x, a_hat, packed):
    """x: [B, N, IN_F] f32; a_hat: [B, N, N] bf16 (precomputed); packed params."""
    B, N, _ = x.shape
    H = HIDDEN

    def full(shape):
        # Whole-array weight block; same block index every step -> stays in VMEM.
        return pl.BlockSpec(shape, lambda b: (0, 0))

    return pl.pallas_call(
        _gnn_mtl_kernel,
        out_shape=jax.ShapeDtypeStruct((B, N, OUT_F), jnp.float32),
        grid=(B,),
        in_specs=[
            pl.BlockSpec((None, N, IN_F), lambda b: (b, 0, 0)),     # x (per graph)
            pl.BlockSpec((None, N, N), lambda b: (b, 0, 0)),        # A_hat (bf16)
            full((IN_F, 64)),                                       # w1
            full((64, H)),                                          # w2
            full((4 * H, H)),                                       # w3|w4|wc1|wc2
            full((H, OUT_F)),                                       # w5
            full((N_BIAS_ROWS, BIAS_LANES)),                        # biases
        ],
        out_specs=pl.BlockSpec((None, N, OUT_F), lambda b: (b, 0, 0)),
        compiler_params=pltpu.CompilerParams(
            dimension_semantics=("parallel",),
        ),
    )(x, a_hat, packed["w1"], packed["w2"], packed["w_mid"],
      packed["w5"], packed["b_all"])


if __name__ == "__main__":
    key = jax.random.PRNGKey(0)
    B, N = 4, 16

    # Node features [B, N, 5] (CoDriving: per-agent 5-d state vector).
    x = jax.random.normal(key, (B, N, IN_F), jnp.float32)

    # Deterministic per-graph bidirectional ring graphs with different strides.
    idx = jnp.arange(N, dtype=jnp.int32)
    adjs = []
    for b in range(B):
        stride = b + 1
        fwd = jnp.stack([idx, (idx + stride) % N])
        bwd = jnp.stack([(idx + stride) % N, idx])
        edge_index = jnp.concatenate([fwd, bwd], axis=1)            # [2, 2N]
        adjs.append(build_gcn_adj(edge_index, N))
    # Precomputed once, off the per-call critical path; bf16 for the MXU.
    a_hat = jnp.stack(adjs).astype(jnp.bfloat16)

    params = init_params(seed=21, hidden=HIDDEN)
    packed = pack_params(params)

    out = gnn_mtl_forward(x, a_hat, packed)
    jax.block_until_ready(out)
    assert out.shape == (B, N, OUT_F) and out.dtype == jnp.float32
    print("KERNEL_OK")
</pallas_src>

<mosaic_0001>
module attributes {stable_mosaic.version = 11 : i64} {
  func.func @_gnn_mtl_kernel(%arg0: i32, %arg1: memref<1x16x5xf32, #tpu.memory_space<vmem>>, %arg2: memref<1x16x16xbf16, #tpu.memory_space<vmem>>, %arg3: memref<5x64xf32, #tpu.memory_space<vmem>>, %arg4: memref<64x32xf32, #tpu.memory_space<vmem>>, %arg5: memref<128x32xf32, #tpu.memory_space<vmem>>, %arg6: memref<32x60xf32, #tpu.memory_space<vmem>>, %arg7: memref<8x128xf32, #tpu.memory_space<vmem>>, %arg8: memref<1x16x60xf32, #tpu.memory_space<vmem>>) attributes {dimension_semantics = [#tpu.dimension_semantics<parallel>], iteration_bounds = array<i64: 4>, scalar_prefetch = 0 : i64, scratch_operands = 0 : i64, tpu.core_type = #tpu.core_type<tc>, window_params = [{transform_indices = @transform_0, window_bounds = array<i64: 1, 16, 5>}, {transform_indices = @transform_1, window_bounds = array<i64: 1, 16, 16>}, {pipeline_mode = #tpu.pipeline_mode<synchronous>, transform_indices = @transform_2, window_bounds = array<i64: 5, 64>}, {pipeline_mode = #tpu.pipeline_mode<synchronous>, transform_indices = @transform_3, window_bounds = array<i64: 64, 32>}, {pipeline_mode = #tpu.pipeline_mode<synchronous>, transform_indices = @transform_4, window_bounds = array<i64: 128, 32>}, {pipeline_mode = #tpu.pipeline_mode<synchronous>, transform_indices = @transform_5, window_bounds = array<i64: 32, 60>}, {pipeline_mode = #tpu.pipeline_mode<synchronous>, transform_indices = @transform_6, window_bounds = array<i64: 8, 128>}, {transform_indices = @transform_7, window_bounds = array<i64: 1, 16, 60>}]} {
    %c0 = arith.constant 0 : index
    %c0_0 = arith.constant 0 : index
    %c0_1 = arith.constant 0 : index
    %0 = vector.load %arg1[%c0, %c0_0, %c0_1] : memref<1x16x5xf32, #tpu.memory_space<vmem>>, vector<1x16x5xf32>
    %1 = vector.shape_cast %0 : vector<1x16x5xf32> to vector<16x5xf32>
    %c0_2 = arith.constant 0 : index
    %c0_3 = arith.constant 0 : index
    %c0_4 = arith.constant 0 : index
    %2 = vector.load %arg2[%c0_2, %c0_3, %c0_4] : memref<1x16x16xbf16, #tpu.memory_space<vmem>>, vector<1x16x16xbf16>
    %3 = vector.shape_cast %2 : vector<1x16x16xbf16> to vector<16x16xbf16>
    %c0_5 = arith.constant 0 : index
    %c0_6 = arith.constant 0 : index
    %4 = vector.load %arg3[%c0_5, %c0_6] : memref<5x64xf32, #tpu.memory_space<vmem>>, vector<5x64xf32>
    %cst = arith.constant dense<0.000000e+00> : vector<16x64xf32>
    %5 = tpu.matmul %1, %4, %cst {dimension_numbers = #tpu.dot_dimension_numbers<[1], [0], [0], [1], [0, 0, 1, 1], [], []>} : vector<16x5xf32>, vector<5x64xf32>, vector<16x64xf32> -> vector<16x64xf32>
    %c0_7 = arith.constant 0 : index
    %c0_8 = arith.constant 0 : index
    %6 = vector.load %arg7[%c0_7, %c0_8] : memref<8x128xf32, #tpu.memory_space<vmem>>, vector<1x64xf32>
    %7 = vector.broadcast %6 : vector<1x64xf32> to vector<16x64xf32>
    %8 = arith.addf %5, %7 : vector<16x64xf32>
    %cst_9 = arith.constant 0.000000e+00 : f32
    %9 = vector.broadcast %cst_9 : f32 to vector<16x64xf32>
    %10 = arith.maximumf %8, %9 : vector<16x64xf32>
    %c0_10 = arith.constant 0 : index
    %c0_11 = arith.constant 0 : index
    %11 = vector.load %arg4[%c0_10, %c0_11] : memref<64x32xf32, #tpu.memory_space<vmem>>, vector<64x32xf32>
    %cst_12 = arith.constant dense<0.000000e+00> : vector<16x32xf32>
    %12 = tpu.matmul %10, %11, %cst_12 {dimension_numbers = #tpu.dot_dimension_numbers<[1], [0], [0], [1], [0, 0, 1, 1], [], []>} : vector<16x64xf32>, vector<64x32xf32>, vector<16x32xf32> -> vector<16x32xf32>
    %c1 = arith.constant 1 : index
    %c0_13 = arith.constant 0 : index
    %13 = vector.load %arg7[%c1, %c0_13] : memref<8x128xf32, #tpu.memory_space<vmem>>, vector<1x32xf32>
    %14 = vector.broadcast %13 : vector<1x32xf32> to vector<16x32xf32>
    %15 = arith.addf %12, %14 : vector<16x32xf32>
    %cst_14 = arith.constant 0.000000e+00 : f32
    %16 = vector.broadcast %cst_14 : f32 to vector<16x32xf32>
    %17 = arith.maximumf %15, %16 : vector<16x32xf32>
    %c0_15 = arith.constant 0 : index
    %c0_16 = arith.constant 0 : index
    %18 = vector.load %arg5[%c0_15, %c0_16] : memref<128x32xf32, #tpu.memory_space<vmem>>, vector<32x32xf32>
    %cst_17 = arith.constant dense<0.000000e+00> : vector<16x32xf32>
    %19 = tpu.matmul %17, %18, %cst_17 {dimension_numbers = #tpu.dot_dimension_numbers<[1], [0], [0], [1], [0, 0, 1, 1], [], []>} : vector<16x32xf32>, vector<32x32xf32>, vector<16x32xf32> -> vector<16x32xf32>
    %c2 = arith.constant 2 : index
    %c0_18 = arith.constant 0 : index
    %20 = vector.load %arg7[%c2, %c0_18] : memref<8x128xf32, #tpu.memory_space<vmem>>, vector<1x32xf32>
    %21 = vector.broadcast %20 : vector<1x32xf32> to vector<16x32xf32>
    %22 = arith.addf %19, %21 : vector<16x32xf32>
    %cst_19 = arith.constant 0.000000e+00 : f32
    %23 = vector.broadcast %cst_19 : f32 to vector<16x32xf32>
    %24 = arith.maximumf %22, %23 : vector<16x32xf32>
    %25 = arith.addf %24, %17 : vector<16x32xf32>
    %c32 = arith.constant 32 : index
    %c0_20 = arith.constant 0 : index
    %26 = vector.load %arg5[%c32, %c0_20] : memref<128x32xf32, #tpu.memory_space<vmem>>, vector<32x32xf32>
    %cst_21 = arith.constant dense<0.000000e+00> : vector<16x32xf32>
    %27 = tpu.matmul %25, %26, %cst_21 {dimension_numbers = #tpu.dot_dimension_numbers<[1], [0], [0], [1], [0, 0, 1, 1], [], []>} : vector<16x32xf32>, vector<32x32xf32>, vector<16x32xf32> -> vector<16x32xf32>
    %c3 = arith.constant 3 : index
    %c0_22 = arith.constant 0 : index
    %28 = vector.load %arg7[%c3, %c0_22] : memref<8x128xf32, #tpu.memory_space<vmem>>, vector<1x32xf32>
    %29 = vector.broadcast %28 : vector<1x32xf32> to vector<16x32xf32>
    %30 = arith.addf %27, %29 : vector<16x32xf32>
    %cst_23 = arith.constant 0.000000e+00 : f32
    %31 = vector.broadcast %cst_23 : f32 to vector<16x32xf32>
    %32 = arith.maximumf %30, %31 : vector<16x32xf32>
    %33 = arith.addf %32, %25 : vector<16x32xf32>
    %c64 = arith.constant 64 : index
    %c0_24 = arith.constant 0 : index
    %34 = vector.load %arg5[%c64, %c0_24] : memref<128x32xf32, #tpu.memory_space<vmem>>, vector<32x32xf32>
    %cst_25 = arith.constant dense<0.000000e+00> : vector<16x32xf32>
    %35 = tpu.matmul %33, %34, %cst_25 {dimension_numbers = #tpu.dot_dimension_numbers<[1], [0], [0], [1], [0, 0, 1, 1], [], []>} : vector<16x32xf32>, vector<32x32xf32>, vector<16x32xf32> -> vector<16x32xf32>
    %36 = arith.truncf %35 : vector<16x32xf32> to vector<16x32xbf16>
    %cst_26 = arith.constant dense<0.000000e+00> : vector<16x32xf32>
    %37 = tpu.matmul %3, %36, %cst_26 {dimension_numbers = #tpu.dot_dimension_numbers<[1], [0], [0], [1], [0, 0, 1, 1], [], []>} : vector<16x16xbf16>, vector<16x32xbf16>, vector<16x32xf32> -> vector<16x32xf32>
    %c4 = arith.constant 4 : index
    %c0_27 = arith.constant 0 : index
    %38 = vector.load %arg7[%c4, %c0_27] : memref<8x128xf32, #tpu.memory_space<vmem>>, vector<1x32xf32>
    %39 = vector.broadcast %38 : vector<1x32xf32> to vector<16x32xf32>
    %40 = arith.addf %37, %39 : vector<16x32xf32>
    %cst_28 = arith.constant 0.000000e+00 : f32
    %41 = vector.broadcast %cst_28 : f32 to vector<16x32xf32>
    %42 = arith.maximumf %40, %41 : vector<16x32xf32>
    %c96 = arith.constant 96 : index
    %c0_29 = arith.constant 0 : index
    %43 = vector.load %arg5[%c96, %c0_29] : memref<128x32xf32, #tpu.memory_space<vmem>>, vector<32x32xf32>
    %cst_30 = arith.constant dense<0.000000e+00> : vector<16x32xf32>
    %44 = tpu.matmul %42, %43, %cst_30 {dimension_numbers = #tpu.dot_dimension_numbers<[1], [0], [0], [1], [0, 0, 1, 1], [], []>} : vector<16x32xf32>, vector<32x32xf32>, vector<16x32xf32> -> vector<16x32xf32>
    %45 = arith.truncf %44 : vector<16x32xf32> to vector<16x32xbf16>
    %cst_31 = arith.constant dense<0.000000e+00> : vector<16x32xf32>
    %46 = tpu.matmul %3, %45, %cst_31 {dimension_numbers = #tpu.dot_dimension_numbers<[1], [0], [0], [1], [0, 0, 1, 1], [], []>} : vector<16x16xbf16>, vector<16x32xbf16>, vector<16x32xf32> -> vector<16x32xf32>
    %c5 = arith.constant 5 : index
    %c0_32 = arith.constant 0 : index
    %47 = vector.load %arg7[%c5, %c0_32] : memref<8x128xf32, #tpu.memory_space<vmem>>, vector<1x32xf32>
    %48 = vector.broadcast %47 : vector<1x32xf32> to vector<16x32xf32>
    %49 = arith.addf %46, %48 : vector<16x32xf32>
    %cst_33 = arith.constant 0.000000e+00 : f32
    %50 = vector.broadcast %cst_33 : f32 to vector<16x32xf32>
    %51 = arith.maximumf %49, %50 : vector<16x32xf32>
    %c0_34 = arith.constant 0 : index
    %c0_35 = arith.constant 0 : index
    %52 = vector.load %arg6[%c0_34, %c0_35] : memref<32x60xf32, #tpu.memory_space<vmem>>, vector<32x60xf32>
    %cst_36 = arith.constant dense<0.000000e+00> : vector<16x60xf32>
    %53 = tpu.matmul %51, %52, %cst_36 {dimension_numbers = #tpu.dot_dimension_numbers<[1], [0], [0], [1], [0, 0, 1, 1], [], []>} : vector<16x32xf32>, vector<32x60xf32>, vector<16x60xf32> -> vector<16x60xf32>
    %c6 = arith.constant 6 : index
    %c0_37 = arith.constant 0 : index
    %54 = vector.load %arg7[%c6, %c0_37] : memref<8x128xf32, #tpu.memory_space<vmem>>, vector<1x60xf32>
    %55 = vector.broadcast %54 : vector<1x60xf32> to vector<16x60xf32>
    %56 = arith.addf %53, %55 : vector<16x60xf32>
    %c0_38 = arith.constant 0 : index
    %c0_39 = arith.constant 0 : index
    %c0_40 = arith.constant 0 : index
    %57 = vector.load %arg8[%c0_38, %c0_39, %c0_40] : memref<1x16x60xf32, #tpu.memory_space<vmem>>, vector<1x16x60xf32>
    %58 = vector.shape_cast %57 : vector<1x16x60xf32> to vector<16x60xf32>
    %59 = vector.shape_cast %56 : vector<16x60xf32> to vector<1x16x60xf32>
    tpu.vector_store %arg8[%c0_38, %c0_39, %c0_40], %59 {strides = array<i32>} : memref<1x16x60xf32, #tpu.memory_space<vmem>>, vector<1x16x60xf32>,
    return
  }
  func.func @transform_0(%arg0: i32) -> (i32, i32, i32) {
    %c0_i32 = arith.constant 0 : i32
    %c0_i32_0 = arith.constant 0 : i32
    %c0_i32_1 = arith.constant 0 : i32
    return %arg0, %c0_i32, %c0_i32_0 : i32, i32, i32
  }
  func.func @transform_1(%arg0: i32) -> (i32, i32, i32) {
    %c0_i32 = arith.constant 0 : i32
    %c0_i32_0 = arith.constant 0 : i32
    %c0_i32_1 = arith.constant 0 : i32
    return %arg0, %c0_i32, %c0_i32_0 : i32, i32, i32
  }
  func.func @transform_2(%arg0: i32) -> (i32, i32) {
    %c0_i32 = arith.constant 0 : i32
    %c0_i32_0 = arith.constant 0 : i32
    %c0_i32_1 = arith.constant 0 : i32
    return %c0_i32, %c0_i32_0 : i32, i32
  }
  func.func @transform_3(%arg0: i32) -> (i32, i32) {
    %c0_i32 = arith.constant 0 : i32
    %c0_i32_0 = arith.constant 0 : i32
    %c0_i32_1 = arith.constant 0 : i32
    return %c0_i32, %c0_i32_0 : i32, i32
  }
  func.func @transform_4(%arg0: i32) -> (i32, i32) {
    %c0_i32 = arith.constant 0 : i32
    %c0_i32_0 = arith.constant 0 : i32
    %c0_i32_1 = arith.constant 0 : i32
    return %c0_i32, %c0_i32_0 : i32, i32
  }
  func.func @transform_5(%arg0: i32) -> (i32, i32) {
    %c0_i32 = arith.constant 0 : i32
    %c0_i32_0 = arith.constant 0 : i32
    %c0_i32_1 = arith.constant 0 : i32
    return %c0_i32, %c0_i32_0 : i32, i32
  }
  func.func @transform_6(%arg0: i32) -> (i32, i32) {
    %c0_i32 = arith.constant 0 : i32
    %c0_i32_0 = arith.constant 0 : i32
    %c0_i32_1 = arith.constant 0 : i32
    return %c0_i32, %c0_i32_0 : i32, i32
  }
  func.func @transform_7(%arg0: i32) -> (i32, i32, i32) {
    %c0_i32 = arith.constant 0 : i32
    %c0_i32_0 = arith.constant 0 : i32
    %c0_i32_1 = arith.constant 0 : i32
    return %arg0, %c0_i32, %c0_i32_0 : i32, i32, i32
  }
}

</mosaic_0001>

<bundles_post_ra>
// kernel: gnn_mtl_forward.1
= control target key start
LH: loop header
LB: loop body
LE: loop exit
PB: predicated region body
PF: predicated region fallthrough
CT: control target
= control target key end

     0   :  { %12 = vsyncpa [#allocation3], 0  ;;  %s1699_s0 = inlined_call_operand.vmem [shape: f32[4,16,5], index: 0, kind: input, shape index: {}]   ;;  %s1700_s1 = inlined_call_operand.vmem [shape: bf16[4,16,16], index: 1, kind: input, shape index: {}]   ;;  %s1701_s2 = inlined_call_operand.vmem [shape: f32[5,64], index: 2, kind: input, shape index: {}]   ;;  %s1702_s3 = inlined_call_operand.vmem [shape: f32[64,32], index: 3, kind: input, shape index: {}]   ;;  %s1703_s4 = inlined_call_operand.vmem [shape: f32[128,32], index: 4, kind: input, shape index: {}]   ;;  %s1704_s5 = inlined_call_operand.vmem [shape: f32[32,60], index: 5, kind: input, shape index: {}]   ;;  %s1705_s6 = inlined_call_operand.vmem [shape: f32[8,128], index: 6, kind: input, shape index: {}]   ;;  %s1706_s7 = inlined_call_operand.hbm [shape: f32[4,16,60], index: 7, kind: output, shape index: {}]  }
   0x1   :  { %14 = vsyncpa [#allocation3 + $0x1], 0  ;;  %s1471_s24 = smov 0   ;;  %s1473_s25 = smov 0  }
   0x2   :  { %s1475_s26 = smov 0   ;;  %s1477_s27 = smov 0  }
   0x3 LB: > { %s1492_s28 = sadd.s32 4294967295, %s1424_s27   ;;  %s1140_s29 = sadd.s32 4294967294, %s1424_s27   ;;  %s1424_s27 = sphi %s1477_s27, %s1712_s27   ;;  %s1420_s26 = sphi %s1475_s26, %s1711_s26   ;;  %s1416_s25 = sphi %s1473_s25, %s1710_s25   ;;  %s1412_s24 = sphi %s1471_s24, %s1709_s24  }
   0x4   : > { %s1496_s30 = sadd.s32 1, %s1424_s27   ;;  %s184_s8 = sadd.s32 1, %s1420_s26 }
   0x5   : > { %s181_s9 = ssub.s32 %s1424_s27, %s1496_s30  ;;  %p194_p0 = scmp.ne.s32.totalorder %s1420_s26, %s1416_s25 }
   0x6   : > { %p182_p1 = scmp.eq.s32.totalorder %s181_s9, 0  ;;  %p195_p2 = scmp.eq.s32.totalorder %s1492_s28, 3 }
   0x7   : > { %p200_p3 = scmp.ne.s32.totalorder %s1416_s25, %s1412_s24  ;;  %p201_p4 = scmp.eq.s32.totalorder %s1140_s29, 3 }
   0x8   : > { %s1507_s10 = scalar_select %p182_p1, %s1420_s26, %s184_s8  }
   0x9   : > { %p1509_p5 = por %p195_p2, %p194_p0  ;;  %p1513_p6 = por %p201_p4, %p200_p3 }
   0xa   : > { %p1143_p7 = scmp.ge.s32.totalorder %s1424_s27, 1  ;;  %p250_p8 = scmp.lt.s32.totalorder %s1424_s27, 5 }
   0xc   : > { %p251_p9 = pnand %p1143_p7, %p250_p8 }
   0xd   : > { %p287_p10 = scmp.lt.s32.totalorder (!%p251_p9), %s1492_s28, 3  ;;  %s1181_s16 = sshll.u32 (!%p251_p9), %s1492_s28, 8 }
   0xe   : > { %254 = sbr.rel (%p251_p9) target bundleno = 1842 (0x732), region = 48  ;;  %s1657_s20 = scalar_lea.hbm (!%p251_p9), %s1706_s7, %s1181_s16 }
  0x13   : > { %v302_v0 = vld [vmem:[%s1701_s2] sm:$0x1f]  ;;  %vm315_vm0 = vcmask 1044480   ;;  %v403_v1 = vld [vmem:[%s1702_s3 + $0x38] sm:$0xff]  ;;  %v402_v2 = vld [vmem:[%s1702_s3 + $0x30] sm:$0xff]  ;;  %s288_s19 = scalar_select %p287_p10, %s1492_s28, 3 }
  0x14   : > { %1229 = vmatprep.subr.msk.mxu0 %vm315_vm0, %v302_v0  ;;  %1234 = vmatprep.subr.mxu1 %v403_v1  ;;  %v401_v3 = vld [vmem:[%s1702_s3 + $0x28] sm:$0xff]  ;;  %vm308_vm1 = vcmask 39936   ;;  %v400_v4 = vld [vmem:[%s1702_s3 + $0x20] sm:$0xff]  ;;  %v399_v7 = vld [vmem:[%s1702_s3 + $0x18] sm:$0xff]  ;;  %vm409_vm2 = vcmask 523264   ;;  %vm502_vm3 = vcmask 261120  }
  0x15   : > { %1230 = vmatpush3.msk.msra.mxu0 %vm315_vm0, %v302_v0  ;;  %1235 = vmatpush3.msra.mxu1 %v403_v1  ;;  %s1179_s22 = sshll.u32 %s288_s19, 4  ;;  %s1180_s23 = sshll.u32 %s288_s19, 3  ;;  %v398_v8 = vld [vmem:[%s1702_s3 + $0x10] sm:$0xff]  ;;  %v397_v9 = vld [vmem:[%s1702_s3 + $0x8] sm:$0xff]  ;;  %v396_v10 = vld [vmem:[%s1702_s3] sm:$0xff]  ;;  %v1426_v55 = vmov 0.0  }
  0x16   : > { %1236 = vmatprep.subr.mxu1 %v402_v2  ;;  %s291_s14 = scalar_lea.vmem %s1699_s0, %s1179_s22  ;;  %s1542_s17 = scalar_lea.vmem %s1700_s1, %s1180_s23  ;;  %v1149_v11 = vld [vmem:[%s1705_s6] ss:$0 sm:$0xff]  ;;  %v496_v18 = vld [vmem:[%s1703_s4 + $0x18] sm:$0xff]  ;;  %v495_v19 = vld [vmem:[%s1703_s4 + $0x10] sm:$0xff]  ;;  %vm1427_vm4 = vmmov 0   ;;  %vm778_vm5 = vcmask 130048  }
  0x17   : > { %1237 = vmatpush3.msra.mxu1 %v402_v2  ;;  %v298_v5 = vld [vmem:[%s291_s14] sm:$0xff]  ;;  %v299_v6 = vld [vmem:[%s291_s14 + $0x8] sm:$0xff]  ;;  %1253 = vmatprep.subr.mxu0 %v496_v18  ;;  %v591_v29 = vld [vmem:[%s1703_s4 + $0x38] sm:$0xff]  ;;  %vm1049_vm6 = vcmask 490496   ;;  %s1428_s22 = smov [#allocation2]  }
  0x18   : > { %1238 = vmatprep.subr.mxu1 %v401_v3  ;;  %1231 = vmatprep.mubr.msk.f32.mxu0 %vm308_vm1, %v298_v5  ;;  %v494_v20 = vld [vmem:[%s1703_s4 + $0x8] sm:$0xff]  ;;  %v493_v21 = vld [vmem:[%s1703_s4] sm:$0xff]  ;;  %v590_v30 = vld [vmem:[%s1703_s4 + $0x30] sm:$0xff]  ;;  %s1368_s23 = sshll.u32 %s1428_s22, 4  ;;  %s1369_s23 = int_to_ptr.vmem [resolvable:$false] %s1368_s23 }
  0x19   : > { %1239 = vmatpush3.msra.mxu1 %v401_v3  ;;  %1232 = vmatmul.mubr.msk.f32.vlgmr.msra.gmra.mxu0 %vm308_vm1, %v299_v6  ;;  %v1153_v22 = vld [vmem:[%s1705_s6 + $0x1] ss:$0 sm:$0xff]  ;;  %v589_v31 = vld [vmem:[%s1703_s4 + $0x28] sm:$0xff]  ;;  %v1156_v33 = vld [vmem:[%s1705_s6 + $0x2] ss:$0 sm:$0xff]  ;;  %s1370_s29 = scalar_lea.vmem %s1369_s23, 512 }
  0x1a   : > { %1240 = vmatprep.subr.mxu1 %v400_v4  ;;  %1254 = vmatpush3.msra.mxu0 %v496_v18  ;;  %v588_v32 = vld [vmem:[%s1703_s4 + $0x20] sm:$0xff]  ;;  %v685_v42 = vld [vmem:[%s1703_s4 + $0x58] sm:$0xff]  ;;  %v684_v43 = vld [vmem:[%s1703_s4 + $0x50] sm:$0xff] }
  0x1b   : > { %1241 = vmatpush3.msra.mxu1 %v400_v4  ;;  %1255 = vmatprep.subr.mxu0 %v495_v19  ;;  %v683_v44 = vld [vmem:[%s1703_s4 + $0x48] sm:$0xff]  ;;  %v682_v45 = vld [vmem:[%s1703_s4 + $0x40] sm:$0xff]  ;;  %v828_v60 = vld [vmem:[%s1703_s4 + $0x78] sm:$0xff] }
  0x1c   : > { %1242 = vmatprep.subr.mxu1 %v399_v7  ;;  %1256 = vmatpush3.msra.mxu0 %v495_v19  ;;  %v1159_v46 = vld [vmem:[%s1705_s6 + $0x3] ss:$0 sm:$0xff]  ;;  %v827_v61 = vld [vmem:[%s1703_s4 + $0x70] sm:$0xff]  ;;  %v826_v62 = vld [vmem:[%s1703_s4 + $0x68] sm:$0xff] }
  0x1d   : > { %1243 = vmatpush3.msra.mxu1 %v399_v7  ;;  %1257 = vmatprep.subr.mxu0 %v494_v20  ;;  %v1363_v59 = vld [vmem:[%s1542_s17] sm:$0xff]   ;;  %s284_s17 = sand.u32 1, %s1416_s25  }
  0x1e   : > { %1244 = vmatprep.subr.mxu1 %v398_v8  ;;  %1258 = vmatpush3.msra.mxu0 %v494_v20  ;;  %v825_v63 = vld [vmem:[%s1703_s4 + $0x60] sm:$0xff]  ;;  %s1144_s8 = sshll.u32 %s284_s17, 4  ;;  %s1659_s21 = scalar_lea.sflag [#allocation3], %s284_s17 }
  0x1f   : > { %1245 = vmatpush3.msra.mxu1 %v398_v8  ;;  %1259 = vmatprep.subr.mxu0 %v493_v21  ;;  %v1164_v0 = vld [vmem:[%s1705_s6 + $0x4] ss:$0 sm:$0xff]  ;;  %s286_s14 = scalar_lea.vmem [#allocation2], %s1144_s8 }
  0x20   : > { %1246 = vmatprep.subr.mxu1 %v397_v9  ;;  %1260 = vmatpush3.msra.mxu0 %v493_v21  ;;  %s1066_s15 = sshll.u32 %s286_s14, 4  ;;  %s1652_s15 = int_to_ptr.vmem [resolvable:$true] %s1066_s15 }
  0x21   : > { %1247 = vmatpush3.msra.mxu1 %v397_v9  ;;  %1264 = vmatprep.subr.mxu0 %v591_v29  ;;  %s1364_s28 = scalar_lea.vmem %s1652_s15, 256  ;;  %p1371_p0 = scmp.lt.s32.totalorder %s1652_s15, %s1369_s23 }
  0x22   : > { %1248 = vmatprep.subr.mxu1 %v396_v10  ;;  %p1365_p11 = scmp.ne.s32.totalorder %s1652_s15, %s1364_s28  ;;  %p1372_p1 = scmp.lt.s32.totalorder %s1370_s29, %s1364_s28 }
  0x23   : > { %1249 = vmatpush3.msra.mxu1 %v396_v10 }
  0x24   : > { %1275 = vmatprep.subr.mxu1 %v685_v42  ;;  %p1366_p12 = pnand %p1365_p11, %p1509_p5  ;;  %p1373_p2 = por %p1372_p1, %p1371_p0 }
  0x26   : > { %p1367_p13 = pneg %p1366_p12 }
  0x28   : > { %p1374_p3 = pnand %p1373_p2, %p1367_p13 }
  0xd9   : > { %v1233_v12 = vpop.f32.mrf.mxu0 }
  0xda   : > { %v391_v13 = vadd.f32 %v1233_v12, %v1149_v11  ;;  %v962_v12 = vld [vmem:[%s1704_s5 + $0x18] sm:$0xff] }
  0xdb   : > { %v385_v14 = vpop.f32.mrf.mxu0 }
  0xdc   : > { %v386_v15 = vadd.f32 %v1149_v11, %v385_v14  ;;  %v395_v17 = vmax.f32 %v391_v13, 0.0  ;;  %v961_v13 = vld [vmem:[%s1704_s5 + $0x10] sm:$0xff]  ;;  %v960_v14 = vld [vmem:[%s1704_s5 + $0x8] sm:$0xff] }
  0xde   : > { %v394_v16 = vmax.f32 %v386_v15, 0.0  ;;  %v959_v15 = vld [vmem:[%s1704_s5] sm:$0xff] }
  0xe0   : > { %1250 = vmatprep.mubr.msk.f32.mxu1 %vm409_vm2, %v394_v16  ;;  %v1169_v16 = vld [vmem:[%s1705_s6 + $0x5] ss:$0 sm:$0xff] }
  0xe1   : > { %1251 = vmatmul.mubr.msk.f32.vlgmr.msra.gmra.mxu1 %vm409_vm2, %v395_v17 }
  0xe2   : > { %1276 = vmatpush3.msra.mxu1 %v685_v42 }
  0xe3   : > { %1277 = vmatprep.subr.mxu1 %v684_v43 }
  0xe4   : > { %1278 = vmatpush3.msra.mxu1 %v684_v43 }
  0xe5   : > { %1279 = vmatprep.subr.mxu1 %v683_v44 }
  0xe6   : > { %1280 = vmatpush3.msra.mxu1 %v683_v44 }
  0xe7   : > { %1281 = vmatprep.subr.mxu1 %v682_v45 }
  0xe8   : > { %1282 = vmatpush3.msra.mxu1 %v682_v45 }
  0xe9   : > { %1303 = vmatprep.subr.bf16.mxu1 %v1426_v55 }
 0x1a1   : > { %v1252_v23 = vpop.f32.mrf.mxu1 }
 0x1a2   : > { %v488_v24 = vadd.f32 %v1252_v23, %v1153_v22 }
 0x1a3   : > { %v482_v25 = vpop.f32.mrf.mxu1 }
 0x1a4   : > { %v483_v26 = vadd.f32 %v1153_v22, %v482_v25  ;;  %v492_v28 = vmax.f32 %v488_v24, 0.0  ;;  %v1171_v25 = vld [vmem:[%s1705_s6 + $0x6] ss:$0 sm:$0xff] }
 0x1a6   : > { %v491_v27 = vmax.f32 %v483_v26, 0.0 }
 0x1a8   : > { %1261 = vmatprep.mubr.msk.f32.mxu0 %vm502_vm3, %v491_v27 }
 0x1a9   : > { %1262 = vmatmul.mubr.msk.f32.vlgmr.msra.gmra.mxu0 %vm502_vm3, %v492_v28 }
 0x1aa   : > { %1265 = vmatpush3.msra.mxu0 %v591_v29 }
 0x1ab   : > { %1266 = vmatprep.subr.mxu0 %v590_v30 }
 0x1ac   : > { %1267 = vmatpush3.msra.mxu0 %v590_v30 }
 0x1ad   : > { %1268 = vmatprep.subr.mxu0 %v589_v31 }
 0x1ae   : > { %1269 = vmatpush3.msra.mxu0 %v589_v31 }
 0x1af   : > { %1270 = vmatprep.subr.mxu0 %v588_v32 }
 0x1b0   : > { %1271 = vmatpush3.msra.mxu0 %v588_v32 }
 0x1b1   : > { %1286 = vmatprep.subr.bf16.mxu0 %v1426_v55 }
 0x269   : > { %v1263_v34 = vpop.f32.mrf.mxu0 }
 0x26a   : > { %v581_v35 = vadd.f32 %v1263_v34, %v1156_v33 }
 0x26b   : > { %v575_v36 = vpop.f32.mrf.mxu0 }
 0x26c   : > { %v576_v37 = vadd.f32 %v1156_v33, %v575_v36  ;;  %v585_v38 = vmax.f32 %v581_v35, 0.0 }
 0x26e   : > { %v584_v39 = vmax.f32 %v576_v37, 0.0  ;;  %v587_v41 = vadd.f32 %v585_v38, %v492_v28 }
 0x270   : > { %v586_v40 = vadd.f32 %v584_v39, %v491_v27 }
 0x272   : > { %1272 = vmatprep.mubr.msk.f32.mxu0 %vm502_vm3, %v586_v40 }
 0x273   : > { %1273 = vmatmul.mubr.msk.f32.vlgmr.msra.gmra.mxu0 %vm502_vm3, %v587_v41 }
 0x274   : > { %1288 = vmatprep.mubr.msk.bf16.mxu0 %vm1427_vm4, %v1426_v55 }
 0x333   : > { %v1274_v47 = vpop.f32.mrf.mxu0 }
 0x334   : > { %v675_v48 = vadd.f32 %v1274_v47, %v1159_v46 }
 0x335   : > { %v669_v49 = vpop.f32.mrf.mxu0 }
 0x336   : > { %v670_v50 = vadd.f32 %v1159_v46, %v669_v49  ;;  %v679_v51 = vmax.f32 %v675_v48, 0.0 }
 0x338   : > { %v678_v52 = vmax.f32 %v670_v50, 0.0  ;;  %v681_v54 = vadd.f32 %v679_v51, %v587_v41 }
 0x33a   : > { %v680_v53 = vadd.f32 %v678_v52, %v586_v40 }
 0x33c   : > { %1283 = vmatprep.mubr.msk.f32.mxu1 %vm502_vm3, %v680_v53 }
 0x33d   : > { %1284 = vmatmul.mubr.msk.f32.vlgmr.msra.gmra.mxu1 %vm502_vm3, %v681_v54 }
 0x33e   : > { %1305 = vmatprep.mubr.msk.bf16.mxu1 %vm1427_vm4, %v1426_v55 }
 0x3fd   : > { %v1285_v56 = vpop.f32.mrf.mxu1 }
 0x3ff   : > { %v758_v57 = vpop.f32.mrf.mxu1 }
 0x400   : > { %v767_v58 = vpack.c.bf16 %v1285_v56, %v758_v57 }
 0x402   : > { %1287 = vmatpush3.bf16.msra.mxu0 %v767_v58 }
 0x403   : > { %1292 = vmatprep.subr.mxu0 %v828_v60 }
 0x405   : > { %1289 = vmatmul.mubr.msk.bf16.vlgmr.msra.gmra.mxu0 %vm778_vm5, %v1363_v59 }
 0x406   : > { %1293 = vmatpush3.msra.mxu0 %v828_v60 }
 0x407   : > { %1294 = vmatprep.subr.mxu0 %v827_v61 }
 0x408   : > { %1295 = vmatpush3.msra.mxu0 %v827_v61 }
 0x409   : > { %1296 = vmatprep.subr.mxu0 %v826_v62 }
 0x40a   : > { %1297 = vmatpush3.msra.mxu0 %v826_v62 }
 0x40b   : > { %1298 = vmatprep.subr.mxu0 %v825_v63 }
 0x40c   : > { %1299 = vmatpush3.msra.mxu0 %v825_v63 }
 0x4c5   : > { %v816_v1 = vpop.f32.mrf.mxu0 }
 0x4c6   : > { %v817_v2 = vadd.f32 %v1164_v0, %v816_v1 }
 0x4c7   : > { %v1290_v3 = vpop.f32.mrf.mxu0 }
 0x4c8   : > { %v823_v4 = vmax.f32 %v817_v2, 0.0 }
 0x4c9   : > { %v819_v5 = vpop.f32.mrf.mxu0 }
 0x4ca   : > { %v820_v6 = vadd.f32 %v1164_v0, %v819_v5  ;;  %1300 = vmatprep.mubr.msk.f32.mxu0 %vm502_vm3, %v823_v4 }
 0x4cb   : > { %v1291_v7 = vpop.f32.mrf.mxu0 }
 0x4cc   : > { %v824_v8 = vmax.f32 %v820_v6, 0.0 }
 0x4ce   : > { %1301 = vmatmul.mubr.msk.f32.vlgmr.msra.gmra.mxu0 %vm502_vm3, %v824_v8 }
 0x58e   : > { %v1302_v9 = vpop.f32.mrf.mxu0 }
 0x590   : > { %v901_v10 = vpop.f32.mrf.mxu0 }
 0x591   : > { %v910_v11 = vpack.c.bf16 %v1302_v9, %v901_v10 }
 0x593   : > { %1304 = vmatpush3.bf16.msra.mxu1 %v910_v11 }
 0x594   : > { %1309 = vmatprep.subr.mxu1 %v962_v12 }
 0x596   : > { %1306 = vmatmul.mubr.msk.bf16.vlgmr.msra.gmra.mxu1 %vm778_vm5, %v1363_v59 }
 0x597   : > { %1310 = vmatpush3.msra.mxu1 %v962_v12 }
 0x598   : > { %1311 = vmatprep.subr.mxu1 %v961_v13 }
 0x599   : > { %1312 = vmatpush3.msra.mxu1 %v961_v13 }
 0x59a   : > { %1313 = vmatprep.subr.mxu1 %v960_v14 }
 0x59b   : > { %1314 = vmatpush3.msra.mxu1 %v960_v14 }
 0x59c   : > { %1315 = vmatprep.subr.mxu1 %v959_v15 }
 0x59d   : > { %1316 = vmatpush3.msra.mxu1 %v959_v15 }
 0x656   : > { %v950_v17 = vpop.f32.mrf.mxu1 }
 0x657   : > { %v951_v18 = vadd.f32 %v1169_v16, %v950_v17 }
 0x658   : > { %v1307_v19 = vpop.f32.mrf.mxu1 }
 0x659   : > { %v957_v20 = vmax.f32 %v951_v18, 0.0 }
 0x65a   : > { %v953_v21 = vpop.f32.mrf.mxu1 }
 0x65b   : > { %v954_v22 = vadd.f32 %v1169_v16, %v953_v21  ;;  %1317 = vmatprep.mubr.msk.f32.mxu1 %vm502_vm3, %v957_v20 }
 0x65c   : > { %v1308_v23 = vpop.f32.mrf.mxu1 }
 0x65d   : > { %v958_v24 = vmax.f32 %v954_v22, 0.0 }
 0x65f   : > { %1318 = vmatmul.mubr.msk.f32.vlgmr.msra.gmra.mxu1 %vm502_vm3, %v958_v24 }
 0x71f   : > { %v1319_v26 = vpop.f32.mrf.mxu1 }
 0x720   : > { %v1046_v27 = vadd.f32 %v1319_v26, %v1171_v25 }
 0x721   : > { %v1040_v28 = vpop.f32.mrf.mxu1 }
 0x722   : > { %1051 = vst.msk [vmem:[%s286_s14 + $0x8] sm:$0xff] %vm1049_vm6, %v1046_v27  ;;  %v1041_v29 = vadd.f32 %v1171_v25, %v1040_v28 }
 0x724   : > { %1050 = vst.msk [vmem:[%s286_s14] sm:$0xff] %vm1049_vm6, %v1041_v29 }
 0x725   : > { %1377 = shalt.err (!%p1374_p3)
}
 0x726   : > { %s1378_s17 = scalar_lea.hbm %s1657_s20, 256  ;;  %s1382_s13 = scalar_lea.hbm %s1706_s7, 1024 }
 0x727   : > { %p1379_p4 = scmp.ne.s32.totalorder %s1657_s20, %s1378_s17  ;;  %p1383_p9 = scmp.lt.s32.totalorder %s1657_s20, %s1706_s7 }
 0x728   : > { %p1384_p10 = scmp.lt.s32.totalorder %s1382_s13, %s1378_s17 }
 0x729   : > { %p1380_p7 = pnand %p1379_p4, %p1509_p5 }
 0x72a   : > { %p1385_p11 = por %p1384_p10, %p1383_p9 }
 0x72b   : > { %p1381_p8 = pneg %p1380_p7 }
 0x72d   : > { %p1386_p12 = pnand %p1385_p11, %p1381_p8 }
 0x72f   : > { %1389 = shalt.err (!%p1386_p12)
}
 0x730   : > { %s1429_s18 = smov 128   ;;  %s1430_s19 = smov 8  }
 0x731   : > { %1320 = dma.vmem_to_hbm [thread:$0]  (%p1509_p5), %s1652_s15, 256, %s1657_s20, %s1659_s21, %s1429_s18, %s1429_s18, %s1430_s19  }
 0x732 PF: > { %p1326_p13 = scmp.ge.s32.totalorder %s1424_s27, 2  ;;  %s1081_s28 = sand.u32 1, %s1412_s24  }
 0x733   : > { %s1082_s22 = scalar_lea.sflag [#allocation3], %s1081_s28 }
 0x734   : > { %p1323_p0 = pnand %p1326_p13, %p1513_p6 }
 0x736   : > { %p1324_p1 = pneg %p1323_p0 }
 0x738   : > { %1407 = dma.done.wait (%p1324_p1), %s1082_s22, 256  }
 0x739   : > { %1409 = vsyncadd (%p1324_p1), %s1082_s22, 4294967040  ;;  %p17_p2 = scmp.ge.s32.totalorder %s1496_s30, 6   ;;  %s1709_s24 = smov %s1416_s25 }
 0x73a   : > { %s1710_s25 = smov %s1420_s26  ;;  %s1711_s26 = smov %s1507_s10 }
 0x73b   : > { %s1712_s27 = smov %s1496_s30  ;;  %19 = sbr.rel (!%p17_p2) target bundleno = 3 (0x3), region = 86 }
 0x740   :  { %1087 = vsyncpa [#allocation3], 1 }
 0x741   :  { %1089 = vsyncpa [#allocation3 + $0x1], 1 }

</bundles_post_ra>
